<compile_context>
chip_gen: v6e
topology: v6e:2x2x1
jax: 0.10.0
libtpu: 0.0.40
codegen_flags: <defaults>
</compile_context>

<pallas_src>
import functools

import jax
import jax.numpy as jnp
from jax import lax
from jax.experimental import pallas as pl
from jax.experimental.pallas import tpu as pltpu

LANES = 128
ACC_SUBLANES = 8          # (8, 128) f32 accumulator = one vreg
CHUNK_ROWS = 512          # per-chunk f32 temporaries stay at 256 KiB
MAX_ROW_TILE = 8192       # (8192, 128) f32 = 4 MiB per input per block


def _round_up(x, m):
    return (x + m - 1) // m * m


def _cdiv(a, b):
    return -(-a // b)


def _device_config():
    """Per-generation (row splits across TensorCores, vmem_limit_bytes)."""
    try:
        kind = jax.devices()[0].device_kind.lower()
    except Exception:
        kind = ""
    if ("v7" in kind) or ("7x" in kind):
        # 2 TensorCores/chip; 64 MiB physical VMEM -> keep the 32 MiB scope.
        return 2, 32 * 1024 * 1024
    if kind:
        # v5e/v6e: 1 TensorCore; 128 MiB physical VMEM. Raise v5e's 16 MiB
        # scoped default so 16 MiB of double-buffered 8192-row blocks fit.
        return 1, 48 * 1024 * 1024
    # Unknown backend: conservative limit that still fits the pipeline.
    return 1, 32 * 1024 * 1024


def _compose_loss_kernel(pred_ref, tgt_ref, sse_ref, sae_ref, *,
                         rows, row_tile, chunk_rows, steps_per_split,
                         full_blocks, has_tail, needs_guard, two_d_grid):
    """Accumulate per-lane sum-of-squared / sum-of-abs error.

    sse_ref / sae_ref are (8,128) output blocks resident across the trailing
    "arbitrary" grid axis, so they act as VMEM accumulators.
    """
    if two_d_grid:
        half = pl.program_id(0)        # TensorCore split (parallel axis)
        step = pl.program_id(1)        # reduction step (arbitrary axis)
        blk = half * steps_per_split + step
    else:
        step = pl.program_id(0)
        blk = step

    @pl.when(step == 0)
    def _():
        sse_ref[...] = jnp.zeros_like(sse_ref)
        sae_ref[...] = jnp.zeros_like(sae_ref)

    num_chunks = row_tile // chunk_rows

    def chunk_update(r0, carry, masked):
        sse_acc, sae_acc = carry
        d = (pred_ref[pl.ds(r0, chunk_rows), :].astype(jnp.float32)
             - tgt_ref[pl.ds(r0, chunk_rows), :].astype(jnp.float32))
        if masked:
            local_row = lax.broadcasted_iota(jnp.int32, d.shape, 0)
            valid = (blk * row_tile + r0 + local_row) < rows
            d = jnp.where(valid, d, jnp.float32(0.0))
        # Lane-parallel, VPU-only fold of the chunk onto one (8,128) vreg.
        d3 = d.reshape(chunk_rows // ACC_SUBLANES, ACC_SUBLANES, LANES)
        return (sse_acc + jnp.sum(d3 * d3, axis=0),
                sae_acc + jnp.sum(jnp.abs(d3), axis=0))

    def accumulate(masked):
        carry = (sse_ref[...], sae_ref[...])
        if num_chunks == 1:
            carry = chunk_update(0, carry, masked)
        else:
            def body(c, carry):
                r0 = pl.multiple_of(c * chunk_rows, chunk_rows)
                return chunk_update(r0, carry, masked)
            carry = lax.fori_loop(0, num_chunks, body, carry)
        sse_ref[...] = carry[0]
        sae_ref[...] = carry[1]

    if has_tail:
        # Mask cost (iota+cmp+select) only on the single partial tail block.
        @pl.when(blk < full_blocks)
        def _():
            accumulate(masked=False)

        @pl.when(blk == full_blocks)
        def _():
            accumulate(masked=True)
    elif needs_guard:
        # Odd block count on the 2-way split: the clamped duplicate block is
        # skipped entirely (its DMA is wasted but never accumulated).
        @pl.when(blk < full_blocks)
        def _():
            accumulate(masked=False)
    else:
        accumulate(masked=False)


def _fused_error_sums(pred2d, tgt2d, *, num_splits, vmem_limit_bytes):
    """pred2d/tgt2d: (rows, 128). Returns f32 (sum_sq_err, sum_abs_err)."""
    rows, lanes = pred2d.shape
    assert lanes == LANES and rows > 0

    if rows >= CHUNK_ROWS:
        chunk_rows = CHUNK_ROWS
        row_tile = min(MAX_ROW_TILE, (rows // CHUNK_ROWS) * CHUNK_ROWS)
    else:
        chunk_rows = rows   # caller rounds rows to the dtype min sublane tile
        row_tile = rows

    total_blocks = _cdiv(rows, row_tile)
    num_splits = num_splits if total_blocks >= 2 else 1
    steps_per_split = _cdiv(total_blocks, num_splits)
    grid_blocks = num_splits * steps_per_split

    full_blocks = rows // row_tile
    has_tail = (rows % row_tile) != 0
    needs_guard = grid_blocks > full_blocks
    two_d = num_splits > 1

    if two_d:
        grid = (num_splits, steps_per_split)
        dim_sem = ("parallel", "arbitrary")
        if grid_blocks > total_blocks:
            def in_index_map(h, i):
                # Clamp so the DMA never starts fully out of range; the
                # duplicate block is skipped in the kernel.
                return (jnp.minimum(h * steps_per_split + i, total_blocks - 1), 0)
        else:
            def in_index_map(h, i):
                return (h * steps_per_split + i, 0)

        def out_index_map(h, i):
            del i   # resident across the reduction axis -> accumulator
            return (h, 0)
    else:
        grid = (steps_per_split,)
        dim_sem = ("arbitrary",)

        def in_index_map(i):
            return (i, 0)

        def out_index_map(i):
            del i
            return (0, 0)

    kernel = functools.partial(
        _compose_loss_kernel,
        rows=rows, row_tile=row_tile, chunk_rows=chunk_rows,
        steps_per_split=steps_per_split, full_blocks=full_blocks,
        has_tail=has_tail, needs_guard=needs_guard, two_d_grid=two_d)

    in_bytes = rows * LANES * (jnp.dtype(pred2d.dtype).itemsize
                               + jnp.dtype(tgt2d.dtype).itemsize)
    out_bytes = 2 * num_splits * ACC_SUBLANES * LANES * 4
    cost = pl.CostEstimate(flops=5 * rows * LANES, transcendentals=0,
                           bytes_accessed=in_bytes + out_bytes)

    sse_slab, sae_slab = pl.pallas_call(
        kernel,
        out_shape=(
            jax.ShapeDtypeStruct((num_splits * ACC_SUBLANES, LANES), jnp.float32),
            jax.ShapeDtypeStruct((num_splits * ACC_SUBLANES, LANES), jnp.float32),
        ),
        grid_spec=pltpu.PrefetchScalarGridSpec(
            num_scalar_prefetch=0,
            grid=grid,
            in_specs=[
                # Default double buffering; switch to pl.Buffered(3) only if a
                # profile shows exposed DMA waits.
                pl.BlockSpec((row_tile, LANES), in_index_map),
                pl.BlockSpec((row_tile, LANES), in_index_map),
            ],
            out_specs=[
                pl.BlockSpec((ACC_SUBLANES, LANES), out_index_map),
                pl.BlockSpec((ACC_SUBLANES, LANES), out_index_map),
            ],
        ),
        compiler_params=pltpu.CompilerParams(
            dimension_semantics=dim_sem,
            vmem_limit_bytes=int(vmem_limit_bytes)),
        cost_estimate=cost,
    )(pred2d, tgt2d)

    # Tiny final cross-lane reduce done outside the kernel.
    return jnp.sum(sse_slab), jnp.sum(sae_slab)


class ComposeCriterionPallas:
    """JAX/Pallas equivalent of ComposeCriterion({'mse': MSE, 'l1': L1})."""
    # TODO(synk): ComposeCriterion is a generic container over arbitrary
    # user-supplied Criterion modules; only this fixed {mse, l1} pair (both
    # reduction='mean') is fused into a single Pallas pass here.

    def __init__(self):
        self._reductions = {"mse": "mean", "l1": "mean"}
        self._num_splits, self._vmem_limit = _device_config()

    @property
    def reduction(self):
        return dict(self._reductions)

    def forward(self, outputs, targets):
        assert outputs.shape == targets.shape
        total_n = int(outputs.size)
        flat_o = outputs.reshape(-1)
        flat_t = targets.reshape(-1)

        # Dtype-specific minimum sublane tile (8 f32 / 16 bf16 / 32 int8).
        min_itemsize = min(jnp.dtype(outputs.dtype).itemsize,
                           jnp.dtype(targets.dtype).itemsize)
        min_sub = max(ACC_SUBLANES, 32 // min_itemsize)

        main_rows = (total_n // (LANES * min_sub)) * min_sub
        main_n = main_rows * LANES

        sse = jnp.float32(0.0)
        sae = jnp.float32(0.0)
        if main_rows > 0:
            if main_n == total_n:
                o2 = flat_o.reshape(main_rows, LANES)
                t2 = flat_t.reshape(main_rows, LANES)
            else:
                # Kernel covers the leading aligned region only — no
                # full-tensor pad; the short tail is handled below.
                o2 = flat_o[:main_n].reshape(main_rows, LANES)
                t2 = flat_t[:main_n].reshape(main_rows, LANES)
            k_sse, k_sae = _fused_error_sums(
                o2, t2, num_splits=self._num_splits,
                vmem_limit_bytes=self._vmem_limit)
            sse = sse + k_sse
            sae = sae + k_sae
        if main_n < total_n:
            # At most (min_sub*128 + 127) trailing elements: plain-JAX sum.
            d = (flat_o[main_n:] - flat_t[main_n:]).astype(jnp.float32)
            sse = sse + jnp.sum(d * d)
            sae = sae + jnp.sum(jnp.abs(d))

        inv_n = jnp.float32(1.0 / total_n)
        return {"mse": sse * inv_n, "l1": sae * inv_n}


if __name__ == "__main__":
    key = jax.random.PRNGKey(0)
    ko, kt = jax.random.split(key)

    criterion = ComposeCriterionPallas()

    # Small NCHW-shaped outputs / targets (e.g. a dense prediction task).
    B, C, H, W = 2, 4, 16, 16
    outputs = jax.random.normal(ko, (B, C, H, W), dtype=jnp.float32)
    targets = jax.random.normal(kt, (B, C, H, W), dtype=jnp.float32)

    losses = criterion.forward(outputs, targets)
    losses = jax.tree_util.tree_map(jax.block_until_ready, losses)

    ref_mse = jnp.mean((outputs - targets) ** 2)
    ref_l1 = jnp.mean(jnp.abs(outputs - targets))
    assert jnp.allclose(losses["mse"], ref_mse, rtol=1e-5, atol=1e-6)
    assert jnp.allclose(losses["l1"], ref_l1, rtol=1e-5, atol=1e-6)
    assert criterion.reduction == {"mse": "mean", "l1": "mean"}

    # Exercise the chunked fori_loop + masked partial-tail-block path.
    k2o, k2t = jax.random.split(jax.random.PRNGKey(1))
    o_big = jax.random.normal(k2o, (4, 8, 64, 100), dtype=jnp.float32)
    t_big = jax.random.normal(k2t, (4, 8, 64, 100), dtype=jnp.float32)
    big = criterion.forward(o_big, t_big)
    big = jax.tree_util.tree_map(jax.block_until_ready, big)
    assert jnp.allclose(big["mse"], jnp.mean((o_big - t_big) ** 2),
                        rtol=1e-5, atol=1e-6)
    assert jnp.allclose(big["l1"], jnp.mean(jnp.abs(o_big - t_big)),
                        rtol=1e-5, atol=1e-6)

    # Exercise the unaligned-remainder (pure-JAX tail) path.
    k3o, k3t = jax.random.split(jax.random.PRNGKey(2))
    o_odd = jax.random.normal(k3o, (3, 5, 7, 11), dtype=jnp.float32)
    t_odd = jax.random.normal(k3t, (3, 5, 7, 11), dtype=jnp.float32)
    odd = criterion.forward(o_odd, t_odd)
    odd = jax.tree_util.tree_map(jax.block_until_ready, odd)
    assert jnp.allclose(odd["mse"], jnp.mean((o_odd - t_odd) ** 2),
                        rtol=1e-5, atol=1e-6)
    assert jnp.allclose(odd["l1"], jnp.mean(jnp.abs(o_odd - t_odd)),
                        rtol=1e-5, atol=1e-6)

    print("KERNEL_OK")
</pallas_src>

<mosaic_0001>
module attributes {stable_mosaic.version = 11 : i64} {
  func.func @_compose_loss_kernel(%arg0: i32, %arg1: memref<16x128xf32, #tpu.memory_space<vmem>>, %arg2: memref<16x128xf32, #tpu.memory_space<vmem>>, %arg3: memref<8x128xf32, #tpu.memory_space<vmem>>, %arg4: memref<8x128xf32, #tpu.memory_space<vmem>>) attributes {dimension_semantics = [#tpu.dimension_semantics<arbitrary>], iteration_bounds = array<i64: 1>, scalar_prefetch = 0 : i64, scratch_operands = 0 : i64, tpu.core_type = #tpu.core_type<tc>, window_params = [{transform_indices = @transform_0, window_bounds = array<i64: 16, 128>}, {transform_indices = @transform_1, window_bounds = array<i64: 16, 128>}, {pipeline_mode = #tpu.pipeline_mode<synchronous>, transform_indices = @transform_2, window_bounds = array<i64: 8, 128>}, {pipeline_mode = #tpu.pipeline_mode<synchronous>, transform_indices = @transform_3, window_bounds = array<i64: 8, 128>}]} {
    %c0_i32 = arith.constant 0 : i32
    %0 = arith.cmpi eq, %arg0, %c0_i32 : i32
    %1 = arith.extui %0 : i1 to i32
    %c0_i32_0 = arith.constant 0 : i32
    %2 = arith.cmpi ne, %1, %c0_i32_0 : i32
    scf.if %2 {
      %cst_13 = arith.constant 0.000000e+00 : f32
      %17 = vector.broadcast %cst_13 : f32 to vector<8x128xf32>
      %c0_14 = arith.constant 0 : index
      %c0_15 = arith.constant 0 : index
      %18 = vector.load %arg3[%c0_14, %c0_15] : memref<8x128xf32, #tpu.memory_space<vmem>>, vector<8x128xf32>
      tpu.vector_store %arg3[%c0_14, %c0_15], %17 {strides = array<i32>} : memref<8x128xf32, #tpu.memory_space<vmem>>, vector<8x128xf32>,
      %cst_16 = arith.constant 0.000000e+00 : f32
      %19 = vector.broadcast %cst_16 : f32 to vector<8x128xf32>
      %c0_17 = arith.constant 0 : index
      %c0_18 = arith.constant 0 : index
      %20 = vector.load %arg4[%c0_17, %c0_18] : memref<8x128xf32, #tpu.memory_space<vmem>>, vector<8x128xf32>
      tpu.vector_store %arg4[%c0_17, %c0_18], %19 {strides = array<i32>} : memref<8x128xf32, #tpu.memory_space<vmem>>, vector<8x128xf32>,
    } else {
    }
    %c0 = arith.constant 0 : index
    %c0_1 = arith.constant 0 : index
    %3 = vector.load %arg3[%c0, %c0_1] : memref<8x128xf32, #tpu.memory_space<vmem>>, vector<8x128xf32>
    %c0_2 = arith.constant 0 : index
    %c0_3 = arith.constant 0 : index
    %4 = vector.load %arg4[%c0_2, %c0_3] : memref<8x128xf32, #tpu.memory_space<vmem>>, vector<8x128xf32>
    %c0_4 = arith.constant 0 : index
    %c0_5 = arith.constant 0 : index
    %5 = vector.load %arg1[%c0_4, %c0_5] : memref<16x128xf32, #tpu.memory_space<vmem>>, vector<16x128xf32>
    %c0_6 = arith.constant 0 : index
    %c0_7 = arith.constant 0 : index
    %6 = vector.load %arg2[%c0_6, %c0_7] : memref<16x128xf32, #tpu.memory_space<vmem>>, vector<16x128xf32>
    %7 = arith.subf %5, %6 : vector<16x128xf32>
    %8 = vector.shape_cast %7 : vector<16x128xf32> to vector<2x8x128xf32>
    %9 = arith.mulf %8, %8 : vector<2x8x128xf32>
    %cst = arith.constant dense<0.000000e+00> : vector<8x128xf32>
    %10 = vector.multi_reduction <add>, %9, %cst [0] : vector<2x8x128xf32> to vector<8x128xf32>
    %11 = arith.addf %3, %10 : vector<8x128xf32>
    %12 = math.absf %8 : vector<2x8x128xf32>
    %cst_8 = arith.constant dense<0.000000e+00> : vector<8x128xf32>
    %13 = vector.multi_reduction <add>, %12, %cst_8 [0] : vector<2x8x128xf32> to vector<8x128xf32>
    %14 = arith.addf %4, %13 : vector<8x128xf32>
    %c0_9 = arith.constant 0 : index
    %c0_10 = arith.constant 0 : index
    %15 = vector.load %arg3[%c0_9, %c0_10] : memref<8x128xf32, #tpu.memory_space<vmem>>, vector<8x128xf32>
    tpu.vector_store %arg3[%c0_9, %c0_10], %11 {strides = array<i32>} : memref<8x128xf32, #tpu.memory_space<vmem>>, vector<8x128xf32>,
    %c0_11 = arith.constant 0 : index
    %c0_12 = arith.constant 0 : index
    %16 = vector.load %arg4[%c0_11, %c0_12] : memref<8x128xf32, #tpu.memory_space<vmem>>, vector<8x128xf32>
    tpu.vector_store %arg4[%c0_11, %c0_12], %14 {strides = array<i32>} : memref<8x128xf32, #tpu.memory_space<vmem>>, vector<8x128xf32>,
    return
  }
  func.func @transform_0(%arg0: i32) -> (i32, i32) {
    %c0_i32 = arith.constant 0 : i32
    %c0_i32_0 = arith.constant 0 : i32
    return %arg0, %c0_i32 : i32, i32
  }
  func.func @transform_1(%arg0: i32) -> (i32, i32) {
    %c0_i32 = arith.constant 0 : i32
    %c0_i32_0 = arith.constant 0 : i32
    return %arg0, %c0_i32 : i32, i32
  }
  func.func @transform_2(%arg0: i32) -> (i32, i32) {
    %c0_i32 = arith.constant 0 : i32
    %c0_i32_0 = arith.constant 0 : i32
    %c0_i32_1 = arith.constant 0 : i32
    return %c0_i32, %c0_i32_0 : i32, i32
  }
  func.func @transform_3(%arg0: i32) -> (i32, i32) {
    %c0_i32 = arith.constant 0 : i32
    %c0_i32_0 = arith.constant 0 : i32
    %c0_i32_1 = arith.constant 0 : i32
    return %c0_i32, %c0_i32_0 : i32, i32
  }
}

</mosaic_0001>

<bundles_post_ra>
// kernel: tpu_custom_call.1
= control target key start
LH: loop header
LB: loop body
LE: loop exit
PB: predicated region body
PF: predicated region fallthrough
CT: control target
= control target key end

     0   :  { %9 = vsyncpa [#allocation3], 0  ;;  %s230_s0 = inlined_call_operand.hbm [shape: f32[16,128], index: 0, kind: input, shape index: {}]   ;;  %s231_s1 = inlined_call_operand.hbm [shape: f32[16,128], index: 1, kind: input, shape index: {}]   ;;  %s232_s2 = inlined_call_operand.hbm [shape: f32[8,128], index: 2, kind: output, shape index: {0}]   ;;  %s233_s3 = inlined_call_operand.hbm [shape: f32[8,128], index: 3, kind: output, shape index: {1}]  }
   0x1   :  { %10 = vsyncpa [#allocation6], 0 }
   0x2   :  { %11 = vsyncpa [#allocation4], 0 }
   0x3   :  { %12 = vsyncpa [#allocation9], 0  ;;  %s192_s12 = smov [#allocation2]  }
   0x4   :  { %s18_s13 = sshll.u32 %s192_s12, 4  ;;  %s19_s13 = int_to_ptr.vmem [resolvable:$true] %s18_s13 }
   0x5   :  { %s112_s14 = scalar_lea.vmem %s19_s13, 256  ;;  %p117_p1 = scmp.lt.s32.totalorder %s19_s13, %s19_s13 }
   0x6   :  { %p113_p0 = scmp.ne.s32.totalorder %s19_s13, %s112_s14  ;;  %p118_p2 = scmp.lt.s32.totalorder %s112_s14, %s112_s14 }
   0x8   :  { %p119_p3 = por %p118_p2, %p117_p1 }
   0xa   :  { %p120_p4 = pnand %p119_p3, %p113_p0 }
   0xc   :  { %123 = shalt.err (!%p120_p4)
}
   0xd   :  { %s193_s15 = smov 128   ;;  %s194_s16 = smov 8  }
   0xe   :  { %24 = dma.hbm_to_vmem [thread:$0]  %s230_s0, 256, %s19_s13, [#allocation3], %s193_s15, %s193_s15, %s194_s16  }
   0xf   :  { %s195_s19 = smov [#allocation5]  }
  0x10   :  { %s30_s20 = sshll.u32 %s195_s19, 4  ;;  %s31_s20 = int_to_ptr.vmem [resolvable:$true] %s30_s20 }
  0x11   :  { %s132_s21 = scalar_lea.vmem %s31_s20, 256  ;;  %p137_p6 = scmp.lt.s32.totalorder %s31_s20, %s31_s20 }
  0x12   :  { %p133_p5 = scmp.ne.s32.totalorder %s31_s20, %s132_s21  ;;  %p138_p7 = scmp.lt.s32.totalorder %s132_s21, %s132_s21 }
  0x14   :  { %p139_p8 = por %p138_p7, %p137_p6 }
  0x16   :  { %p140_p9 = pnand %p139_p8, %p133_p5 }
  0x18   :  { %143 = shalt.err (!%p140_p9)
}
  0x19   :  { %36 = dma.hbm_to_vmem [thread:$0]  %s231_s1, 256, %s31_s20, [#allocation6], %s193_s15, %s193_s15, %s194_s16  }
  0x1a   :  { %184 = dma.done.wait [#allocation3], 256  }
  0x1b   :  { %185 = vsyncadd [#allocation3], 4294967040 }
  0x1c   :  { %186 = dma.done.wait [#allocation6], 256  }
  0x1d   :  { %187 = vsyncadd [#allocation6], 4294967040  ;;  %v51_v0 = vld [vmem:[#allocation2] sm:$0xff]  ;;  %v52_v1 = vld [vmem:[#allocation2 + $0x8] sm:$0xff]  ;;  %s196_s0 = smov [#allocation7]   ;;  %s197_s25 = smov [#allocation8]  }
  0x1e   :  { %v53_v2 = vld [vmem:[#allocation5] sm:$0xff]  ;;  %v54_v3 = vld [vmem:[#allocation5 + $0x8] sm:$0xff]  ;;  %s73_s24 = sshll.u32 %s196_s0, 4  ;;  %s83_s1 = sshll.u32 %s197_s25, 4  ;;  %s74_s24 = int_to_ptr.vmem [resolvable:$true] %s73_s24  ;;  %s84_s1 = int_to_ptr.vmem [resolvable:$true] %s83_s1 }
  0x1f   :  { %v55_v4 = vsub.f32 %v51_v0, %v53_v2  ;;  %v56_v5 = vsub.f32 %v52_v1, %v54_v3  ;;  %s144_s26 = scalar_lea.vmem %s74_s24, 128  ;;  %p149_p11 = scmp.lt.s32.totalorder %s74_s24, %s74_s24 }
  0x20   :  { %p145_p10 = scmp.ne.s32.totalorder %s74_s24, %s144_s26  ;;  %p150_p12 = scmp.lt.s32.totalorder %s144_s26, %s144_s26 }
  0x21   :  { %v57_v6 = vmul.f32 %v55_v4, %v55_v4  ;;  %v61_v7 = vand.u32 2147483647, %v55_v4  ;;  %v58_v8 = vmul.f32 %v56_v5, %v56_v5  ;;  %v62_v9 = vand.u32 2147483647, %v56_v5 }
  0x22   :  { %p151_p13 = por %p150_p12, %p149_p11 }
  0x23   :  { %v59_v10 = vadd.f32 %v58_v8, %v57_v6  ;;  %v63_v11 = vadd.f32 %v62_v9, %v61_v7 }
  0x24   :  { %p152_p0 = pnand %p151_p13, %p145_p10 }
  0x25   :  { %65 = vst [vmem:[#allocation7] sm:$0xff] %v59_v10  ;;  %66 = vst [vmem:[#allocation8] sm:$0xff] %v63_v11 }
  0x26   :  { %155 = shalt.err (!%p152_p0)
}
  0x27   :  { %76 = dma.vmem_to_hbm [thread:$0]  %s74_s24, 128, %s232_s2, [#allocation4]  }
  0x28   :  { %s164_s29 = scalar_lea.vmem %s84_s1, 128  ;;  %p169_p2 = scmp.lt.s32.totalorder %s84_s1, %s84_s1 }
  0x29   :  { %p165_p1 = scmp.ne.s32.totalorder %s84_s1, %s164_s29  ;;  %p170_p3 = scmp.lt.s32.totalorder %s164_s29, %s164_s29 }
  0x2b   :  { %p171_p4 = por %p170_p3, %p169_p2 }
  0x2d   :  { %p172_p5 = pnand %p171_p4, %p165_p1 }
  0x2f   :  { %175 = shalt.err (!%p172_p5)
}
  0x30   :  { %86 = dma.vmem_to_hbm [thread:$0]  %s84_s1, 128, %s233_s3, [#allocation9]  }
  0x31   :  { %188 = dma.done.wait [#allocation4], 128  }
  0x32   :  { %189 = vsyncadd [#allocation4], 4294967168 }
  0x33   :  { %190 = dma.done.wait [#allocation9], 128  }
  0x34   :  { %191 = vsyncadd [#allocation9], 4294967168 }
  0x35   :  { %93 = vsyncpa [#allocation3], 1 }
  0x36   :  { %94 = vsyncpa [#allocation6], 1 }
  0x37   :  { %95 = vsyncpa [#allocation4], 1 }
  0x38   :  { %96 = vsyncpa [#allocation9], 1 }

</bundles_post_ra>
